<compile_context>
chip_gen: v7x
topology: tpu7x:2x2x1
jax: 0.10.0
libtpu: 0.0.40
codegen_flags: <defaults>
</compile_context>

<pallas_src>
import functools

import jax
import jax.numpy as jnp
from jax.experimental import pallas as pl
from jax.experimental.pallas import tpu as pltpu


def _round_up(x, m):
    return (x + m - 1) // m * m


def _vmem_capacity_bytes():
    try:
        return int(pltpu.get_tpu_info().vmem_capacity_bytes)
    except Exception:
        return 64 << 20  # conservative default (v7x per-TensorCore VMEM)


def _const_block_spec(block_shape, index_map, *, single_buffer):
    """BlockSpec for a block whose index_map is constant across the grid.

    Double-buffering such a block buys nothing but doubles its VMEM footprint;
    for large weights we request a single buffer (pl.Buffered(1)) so e.g. an
    N=2048 f32 weight costs 16 MiB instead of 32 MiB (the difference between
    fitting and not fitting on v7x's 64 MiB VMEM).
    """
    if single_buffer:
        try:
            return pl.BlockSpec(block_shape, index_map,
                                pipeline_mode=pl.Buffered(1))
        except TypeError:
            pass  # older JAX without pipeline_mode: fall back to default
    return pl.BlockSpec(block_shape, index_map)


# --------------------- weight-resident kernel (small / medium N) ------------
def _resident_kernel(x_ref, wt_ref, b_ref, o_ref):
    # x_ref: [tm, K]   wt_ref: [K, N] (pre-transposed in wrapper)   b_ref: [1, N]
    z = jnp.dot(x_ref[...], wt_ref[...], preferred_element_type=jnp.float32)
    z = z + b_ref[...].astype(jnp.float32)
    # SiLU: z * sigmoid(z) -- logistic goes to the EUP slot (free next to MXU).
    o_ref[...] = (z * jax.nn.sigmoid(z)).astype(o_ref.dtype)


# --------------------- K/N-tiled kernel with f32 accumulator ----------------
def _tiled_kernel(x_ref, wt_ref, b_ref, o_ref, acc_ref):
    k = pl.program_id(2)

    @pl.when(k == 0)
    def _():
        acc_ref[...] = jnp.zeros_like(acc_ref)

    acc_ref[...] += jnp.dot(x_ref[...], wt_ref[...],
                            preferred_element_type=jnp.float32)

    @pl.when(k == pl.num_programs(2) - 1)
    def _():
        z = acc_ref[...] + b_ref[...].astype(jnp.float32)
        o_ref[...] = (z * jax.nn.sigmoid(z)).astype(o_ref.dtype)


def diffusion_block(x, weight, bias, *, block_m=256, block_n=512, block_k=512,
                    compute_dtype=None, out_dtype=None, force_tiled=False):
    """Forward of DiffusionBlockDeprecated: silu(x @ weight.T + bias).

    x:      [B, N] activations
    weight: [N, N] nn.Linear weight (out_features, in_features) -- not transposed
    bias:   [N]
    compute_dtype: MXU dtype. None = auto (bf16 when x is f32; f32 accumulate).
                   Pass jnp.float32 for exact f32 nn.Linear numerics.
    out_dtype: output dtype (default: x.dtype). Pass bf16 to halve writeback DMA.
    """
    B, N = x.shape
    assert weight.shape == (N, N) and bias.shape == (N,)

    out_dtype = x.dtype if out_dtype is None else out_dtype
    if compute_dtype is None:
        # bf16-native MXUs (v5e/v6e/v7x): bf16 inputs, f32 accumulate.
        compute_dtype = jnp.bfloat16 if x.dtype == jnp.float32 else x.dtype
    cdt = jnp.dtype(compute_dtype)

    # Lane-dense feature dim: pad to a multiple of 128 (avoids masked vst.msk
    # partial stores and keeps the MXU at full width). Zero padding is exact.
    Np = _round_up(max(N, 128), 128)

    # One-time wrapper-side transpose + cast of the weight (amortized over all
    # batch tiles; avoids a per-step XLU transpose / per-step VPU cast).
    wT = weight.T  # (in, out): standard ((1,),(0,)) contraction == x @ W.T
    if Np != N:
        pad = Np - N
        wT = jnp.pad(wT, ((0, pad), (0, pad)))
        x_p = jnp.pad(x, ((0, 0), (0, pad)))
        b_p = jnp.pad(bias, ((0, pad),))
    else:
        x_p, b_p = x, bias
    wT = wT.astype(cdt)
    x_p = x_p.astype(cdt)
    b2 = b_p.reshape(1, Np).astype(jnp.float32)

    tm = B if B <= block_m else _round_up(block_m, 8)
    grid_m = pl.cdiv(B, tm)

    vmem_cap = _vmem_capacity_bytes()
    in_isz = cdt.itemsize
    out_isz = jnp.dtype(out_dtype).itemsize

    w_bytes = Np * Np * in_isz
    single_buffer = w_bytes >= (2 << 20)          # only matters for big weights
    w_resident_bytes = w_bytes * (1 if single_buffer else 2)
    io_bytes = 2 * tm * Np * (in_isz + out_isz)   # double-buffered x / y tiles
    resident_fits = (w_resident_bytes + io_bytes) <= int(0.75 * vmem_cap)

    if resident_fits and not force_tiled:
        needed = w_resident_bytes + io_bytes + 2 * Np * 4
        vmem_limit = int(min(vmem_cap, max(2 * needed, 32 << 20)))
        out_p = pl.pallas_call(
            _resident_kernel,
            out_shape=jax.ShapeDtypeStruct((B, Np), out_dtype),
            grid=(grid_m,),
            in_specs=[
                pl.BlockSpec((tm, Np), lambda i: (i, 0)),           # x, pipelined
                _const_block_spec((Np, Np), lambda i: (0, 0),
                                  single_buffer=single_buffer),     # W resident
                _const_block_spec((1, Np), lambda i: (0, 0),
                                  single_buffer=single_buffer),     # bias resident
            ],
            out_specs=pl.BlockSpec((tm, Np), lambda i: (i, 0)),
            compiler_params=pltpu.CompilerParams(
                dimension_semantics=("parallel",),
                vmem_limit_bytes=vmem_limit),
        )(x_p, wT, b2)
    else:
        # Largest tile of (block_*, 512, 256, 128) that is lane-aligned and
        # divides the (128-padded) feature dim exactly -> no garbage K tiles.
        tn = next(t for t in (block_n, 512, 256, 128)
                  if t % 128 == 0 and t <= Np and Np % t == 0)
        tk = next(t for t in (block_k, 512, 256, 128)
                  if t % 128 == 0 and t <= Np and Np % t == 0)
        grid = (grid_m, Np // tn, Np // tk)
        needed = (2 * tm * tk * in_isz + 2 * tk * tn * in_isz
                  + 2 * tm * tn * out_isz + tm * tn * 4 + 2 * tn * 4)
        vmem_limit = int(min(vmem_cap, max(2 * needed, 32 << 20)))
        out_p = pl.pallas_call(
            _tiled_kernel,
            out_shape=jax.ShapeDtypeStruct((B, Np), out_dtype),
            grid=grid,
            in_specs=[
                pl.BlockSpec((tm, tk), lambda i, j, k: (i, k)),
                pl.BlockSpec((tk, tn), lambda i, j, k: (k, j)),
                pl.BlockSpec((1, tn), lambda i, j, k: (0, j)),
            ],
            out_specs=pl.BlockSpec((tm, tn), lambda i, j, k: (i, j)),
            scratch_shapes=[pltpu.VMEM((tm, tn), jnp.float32)],
            compiler_params=pltpu.CompilerParams(
                dimension_semantics=("parallel", "parallel", "arbitrary"),
                vmem_limit_bytes=vmem_limit),
        )(x_p, wT, b2)

    return out_p[:, :N] if Np != N else out_p


if __name__ == "__main__":
    key = jax.random.PRNGKey(0)
    kx, kw, kb = jax.random.split(key, 3)

    def ref_fn(x, w, b):
        z = x @ w.T + b
        return z * jax.nn.sigmoid(z)

    # --- 1) weight-resident path, exact f32 MXU ------------------------------
    batch, nunits = 64, 32
    x = jax.random.normal(kx, (batch, nunits), dtype=jnp.float32)
    bound = 1.0 / (nunits ** 0.5)
    weight = jax.random.uniform(kw, (nunits, nunits), minval=-bound,
                                maxval=bound, dtype=jnp.float32)
    bias = jax.random.uniform(kb, (nunits,), minval=-bound, maxval=bound,
                              dtype=jnp.float32)
    ref = ref_fn(x, weight, bias)

    out = jax.block_until_ready(
        diffusion_block(x, weight, bias, compute_dtype=jnp.float32))
    assert out.shape == (batch, nunits)
    assert jnp.allclose(out, ref, atol=1e-5, rtol=1e-5), "f32 resident mismatch"

    # --- 2) default path: bf16 MXU, f32 accumulate + f32 epilogue ------------
    out_bf16 = jax.block_until_ready(diffusion_block(x, weight, bias))
    assert jnp.allclose(out_bf16, ref, atol=5e-2, rtol=5e-2), "bf16 mismatch"

    # --- 3) K/N-tiled accumulator path, non-divisible batch, padded N --------
    b2, n2 = 40, 200                    # B % tm != 0, N padded 200 -> 256
    x2 = jax.random.normal(kx, (b2, n2), dtype=jnp.float32)
    bound2 = 1.0 / (n2 ** 0.5)
    w2 = jax.random.uniform(kw, (n2, n2), minval=-bound2, maxval=bound2,
                            dtype=jnp.float32)
    bb2 = jax.random.uniform(kb, (n2,), minval=-bound2, maxval=bound2,
                             dtype=jnp.float32)
    ref2 = ref_fn(x2, w2, bb2)

    out2 = jax.block_until_ready(
        diffusion_block(x2, w2, bb2, compute_dtype=jnp.float32,
                        block_m=32, block_n=128, block_k=128, force_tiled=True))
    assert out2.shape == (b2, n2)
    assert not jnp.any(jnp.isnan(out2)), "NaN leaked from padded tiles"
    assert jnp.allclose(out2, ref2, atol=1e-4, rtol=1e-4), "tiled path mismatch"

    print("KERNEL_OK")
</pallas_src>

<mosaic_0001>
module attributes {stable_mosaic.version = 11 : i64} {
  func.func @_resident_kernel(%arg0: i32, %arg1: memref<64x128xf32, #tpu.memory_space<vmem>>, %arg2: memref<128x128xf32, #tpu.memory_space<vmem>>, %arg3: memref<1x128xf32, #tpu.memory_space<vmem>>, %arg4: memref<64x128xf32, #tpu.memory_space<vmem>>) attributes {dimension_semantics = [#tpu.dimension_semantics<parallel>], iteration_bounds = array<i64: 1>, scalar_prefetch = 0 : i64, scratch_operands = 0 : i64, tpu.core_type = #tpu.core_type<tc>, window_params = [{transform_indices = @transform_0, window_bounds = array<i64: 64, 128>}, {pipeline_mode = #tpu.pipeline_mode<synchronous>, transform_indices = @transform_1, window_bounds = array<i64: 128, 128>}, {pipeline_mode = #tpu.pipeline_mode<synchronous>, transform_indices = @transform_2, window_bounds = array<i64: 1, 128>}, {transform_indices = @transform_3, window_bounds = array<i64: 64, 128>}]} {
    %c0 = arith.constant 0 : index
    %c0_0 = arith.constant 0 : index
    %0 = vector.load %arg1[%c0, %c0_0] : memref<64x128xf32, #tpu.memory_space<vmem>>, vector<64x128xf32>
    %c0_1 = arith.constant 0 : index
    %c0_2 = arith.constant 0 : index
    %1 = vector.load %arg2[%c0_1, %c0_2] : memref<128x128xf32, #tpu.memory_space<vmem>>, vector<128x128xf32>
    %cst = arith.constant dense<0.000000e+00> : vector<64x128xf32>
    %2 = tpu.matmul %0, %1, %cst {dimension_numbers = #tpu.dot_dimension_numbers<[1], [0], [0], [1], [0, 0, 1, 1], [], []>} : vector<64x128xf32>, vector<128x128xf32>, vector<64x128xf32> -> vector<64x128xf32>
    %c0_3 = arith.constant 0 : index
    %c0_4 = arith.constant 0 : index
    %3 = vector.load %arg3[%c0_3, %c0_4] : memref<1x128xf32, #tpu.memory_space<vmem>>, vector<1x128xf32>
    %4 = vector.broadcast %3 : vector<1x128xf32> to vector<64x128xf32>
    %5 = arith.addf %2, %4 : vector<64x128xf32>
    %6 = arith.negf %5 : vector<64x128xf32>
    %7 = math.exp %6 : vector<64x128xf32>
    %cst_5 = arith.constant 1.000000e+00 : f32
    %8 = vector.broadcast %cst_5 : f32 to vector<64x128xf32>
    %9 = arith.addf %8, %7 : vector<64x128xf32>
    %10 = arith.divf %8, %9 : vector<64x128xf32>
    %11 = arith.mulf %5, %10 : vector<64x128xf32>
    %c0_6 = arith.constant 0 : index
    %c0_7 = arith.constant 0 : index
    %12 = vector.load %arg4[%c0_6, %c0_7] : memref<64x128xf32, #tpu.memory_space<vmem>>, vector<64x128xf32>
    tpu.vector_store %arg4[%c0_6, %c0_7], %11 {strides = array<i32>} : memref<64x128xf32, #tpu.memory_space<vmem>>, vector<64x128xf32>,
    return
  }
  func.func @transform_0(%arg0: i32) -> (i32, i32) {
    %c0_i32 = arith.constant 0 : i32
    %c0_i32_0 = arith.constant 0 : i32
    return %arg0, %c0_i32 : i32, i32
  }
  func.func @transform_1(%arg0: i32) -> (i32, i32) {
    %c0_i32 = arith.constant 0 : i32
    %c0_i32_0 = arith.constant 0 : i32
    %c0_i32_1 = arith.constant 0 : i32
    return %c0_i32, %c0_i32_0 : i32, i32
  }
  func.func @transform_2(%arg0: i32) -> (i32, i32) {
    %c0_i32 = arith.constant 0 : i32
    %c0_i32_0 = arith.constant 0 : i32
    %c0_i32_1 = arith.constant 0 : i32
    return %c0_i32, %c0_i32_0 : i32, i32
  }
  func.func @transform_3(%arg0: i32) -> (i32, i32) {
    %c0_i32 = arith.constant 0 : i32
    %c0_i32_0 = arith.constant 0 : i32
    return %arg0, %c0_i32 : i32, i32
  }
}

</mosaic_0001>

<bundles_post_ra>
// kernel: tpu_custom_call.1
= control target key start
LH: loop header
LB: loop body
LE: loop exit
PB: predicated region body
PF: predicated region fallthrough
CT: control target
= control target key end

     0   :  { %8 = vsyncpa [#allocation3], 0  ;;  %s568_s0 = inlined_call_operand.hbm [shape: f32[64,128], index: 0, kind: input, shape index: {}]   ;;  %s569_s1 = inlined_call_operand.hbm [shape: f32[128,128], index: 1, kind: input, shape index: {}]   ;;  %s570_s2 = inlined_call_operand.vmem [shape: f32[1,128], index: 2, kind: input, shape index: {}]   ;;  %s571_s3 = inlined_call_operand.hbm [shape: f32[64,128], index: 3, kind: output, shape index: {}]  }
   0x1   :  { %9 = vsyncpa [#allocation6], 0 }
   0x2   :  { %10 = vsyncpa [#allocation4], 0  ;;  %s495_s12 = smov [#allocation2]   ;;  %s423_s16 = scalar_lea.hbm %s568_s0, 1024 }
   0x3   :  { %s16_s13 = sshll.u32 %s495_s12, 4  ;;  %p424_p0 = scmp.ne.s32.totalorder %s568_s0, %s423_s16  ;;  %s17_s13 = int_to_ptr.vmem [resolvable:$true] %s16_s13 }
   0x4   :  { %p427_p1 = scmp.lt.u32.totalorder %s423_s16, %s568_s0 }
   0x6   :  { %p429_p2 = pnand %p427_p1, %p424_p0 }
   0x8   :  { %432 = shalt.err (!%p429_p2)
}
   0x9   :  { %s433_s21 = scalar_lea.vmem %s17_s13, 1024  ;;  %p438_p4 = scmp.lt.s32.totalorder %s17_s13, %s17_s13 }
   0xa   :  { %p434_p3 = scmp.ne.s32.totalorder %s17_s13, %s433_s21  ;;  %p439_p5 = scmp.lt.s32.totalorder %s433_s21, %s433_s21 }
   0xc   :  { %p440_p6 = por %p439_p5, %p438_p4 }
   0xe   :  { %p441_p7 = pnand %p440_p6, %p434_p3 }
  0x10   :  { %444 = shalt.err (!%p441_p7)
}
  0x11   :  { %s496_s22 = smov 128   ;;  %s497_s23 = smov 8  }
  0x12   :  { %22 = dma.hbm_to_vmem [thread:$0]  %s568_s0, 1024, %s17_s13, [#allocation3], %s496_s22, %s496_s22, %s497_s23  }
  0x13   :  { %s498_s26 = smov [#allocation5]   ;;  %s445_s30 = scalar_lea.hbm %s569_s1, 2048 }
  0x14   :  { %s28_s27 = sshll.u32 %s498_s26, 4  ;;  %p446_p8 = scmp.ne.s32.totalorder %s569_s1, %s445_s30  ;;  %s29_s27 = int_to_ptr.vmem [resolvable:$true] %s28_s27 }
  0x15   :  { %p449_p9 = scmp.lt.u32.totalorder %s445_s30, %s569_s1 }
  0x17   :  { %p451_p10 = pnand %p449_p9, %p446_p8 }
  0x19   :  { %454 = shalt.err (!%p451_p10)
}
  0x1a   :  { %s455_s8 = scalar_lea.vmem %s29_s27, 2048  ;;  %p460_p12 = scmp.lt.s32.totalorder %s29_s27, %s29_s27 }
  0x1b   :  { %p456_p11 = scmp.ne.s32.totalorder %s29_s27, %s455_s8  ;;  %p461_p13 = scmp.lt.s32.totalorder %s455_s8, %s455_s8 }
  0x1d   :  { %p462_p0 = por %p461_p13, %p460_p12 }
  0x1f   :  { %p463_p1 = pnand %p462_p0, %p456_p11 }
  0x21   :  { %466 = shalt.err (!%p463_p1)
}
  0x22   :  { %34 = dma.hbm_to_vmem [thread:$0]  %s569_s1, 2048, %s29_s27, [#allocation6], %s496_s22, %s496_s22, %s497_s23  }
  0x23   :  { %489 = dma.done.wait [#allocation3], 1024  }
  0x24   :  { %490 = vsyncadd [#allocation3], 4294966272 }
  0x25   :  { %491 = dma.done.wait [#allocation6], 2048  }
  0x26   :  { %492 = vsyncadd [#allocation6], 4294965248  ;;  %v51_v0 = vld [vmem:[#allocation5] sm:$0xff]  ;;  %v52_v1 = vld [vmem:[#allocation5 + $0x8] sm:$0xff] }
  0x27   :  { %v53_v2 = vld [vmem:[#allocation5 + $0x10] sm:$0xff]  ;;  %v338_v3 = vpack.c.bf16 %v52_v1, %v51_v0  ;;  %v54_v4 = vld [vmem:[#allocation5 + $0x18] sm:$0xff]  ;;  %v55_v6 = vld [vmem:[#allocation5 + $0x20] sm:$0xff] }
  0x28   :  { %v342_v5 = vpack.c.bf16 %v54_v4, %v53_v2  ;;  %v56_v7 = vld [vmem:[#allocation5 + $0x28] sm:$0xff]  ;;  %v43_v9 = vld [vmem:[#allocation2] sm:$0xff]  ;;  %v57_v11 = vld [vmem:[#allocation5 + $0x30] sm:$0xff] }
  0x29   :  { %339 = vmatprep.subr.bf16.mxu0 %v338_v3  ;;  %370 = vmatprep.subr.bf16.mxu1 %v338_v3  ;;  %v346_v8 = vpack.c.bf16 %v56_v7, %v55_v6  ;;  %v47_v10 = vld [vmem:[#allocation2 + $0x20] sm:$0xff]  ;;  %v58_v12 = vld [vmem:[#allocation5 + $0x38] sm:$0xff]  ;;  %v60_v15 = vld [vmem:[#allocation5 + $0x48] sm:$0xff] }
  0x2a   :  { %341 = vmatpush3.bf16.msra.mxu0 %v338_v3  ;;  %378 = vmatpush3.bf16.msra.mxu1 %v338_v3  ;;  %v350_v13 = vpack.c.bf16 %v58_v12, %v57_v11  ;;  %v59_v14 = vld [vmem:[#allocation5 + $0x40] sm:$0xff]  ;;  %v61_v17 = vld [vmem:[#allocation5 + $0x50] sm:$0xff]  ;;  %v62_v18 = vld [vmem:[#allocation5 + $0x58] sm:$0xff] }
  0x2b   :  { %343 = vmatprep.subr.bf16.mxu0 %v342_v5  ;;  %371 = vmatprep.subr.bf16.mxu1 %v342_v5  ;;  %v354_v16 = vpack.c.bf16 %v60_v15, %v59_v14  ;;  %v358_v19 = vpack.c.bf16 %v62_v18, %v61_v17  ;;  %v63_v20 = vld [vmem:[#allocation5 + $0x60] sm:$0xff]  ;;  %v64_v21 = vld [vmem:[#allocation5 + $0x68] sm:$0xff]  ;;  %v65_v23 = vld [vmem:[#allocation5 + $0x70] sm:$0xff] }
  0x2c   :  { %326 = vmatprep.mubr.f32.mxu0 %v43_v9  ;;  %332 = vmatprep.mubr.f32.mxu1 %v47_v10  ;;  %v362_v22 = vpack.c.bf16 %v64_v21, %v63_v20  ;;  %v66_v24 = vld [vmem:[#allocation5 + $0x78] sm:$0xff]  ;;  %v44_v26 = vld [vmem:[#allocation2 + $0x8] sm:$0xff]  ;;  %v45_v28 = vld [vmem:[#allocation2 + $0x10] sm:$0xff] }
  0x2d   :  { %v366_v25 = vpack.c.bf16 %v66_v24, %v65_v23  ;;  %v48_v27 = vld [vmem:[#allocation2 + $0x28] sm:$0xff]  ;;  %v49_v29 = vld [vmem:[#allocation2 + $0x30] sm:$0xff]  ;;  %v46_v30 = vld [vmem:[#allocation2 + $0x18] sm:$0xff] }
  0x2e   :  { %345 = vmatpush3.bf16.msra.mxu0 %v342_v5  ;;  %379 = vmatpush3.bf16.msra.mxu1 %v342_v5  ;;  %v50_v31 = vld [vmem:[#allocation2 + $0x38] sm:$0xff]  ;;  %v261_v32 = vld [vmem:[%s570_s2] ss:$0 sm:$0xff]  ;;  %s499_s2 = smov [#allocation7]  }
  0x2f   :  { %347 = vmatprep.subr.bf16.mxu0 %v346_v8  ;;  %372 = vmatprep.subr.bf16.mxu1 %v346_v8  ;;  %s248_s11 = sshll.u32 %s499_s2, 4  ;;  %s249_s11 = int_to_ptr.vmem [resolvable:$true] %s248_s11 }
  0x30   :  { %s467_s12 = scalar_lea.vmem %s249_s11, 1024  ;;  %p472_p3 = scmp.lt.s32.totalorder %s249_s11, %s249_s11 }
  0x31   :  { %p468_p2 = scmp.ne.s32.totalorder %s249_s11, %s467_s12  ;;  %p473_p4 = scmp.lt.s32.totalorder %s467_s12, %s467_s12 }
  0x32   :  { %349 = vmatpush3.bf16.msra.mxu0 %v346_v8  ;;  %380 = vmatpush3.bf16.msra.mxu1 %v346_v8 }
  0x33   :  { %351 = vmatprep.subr.bf16.mxu0 %v350_v13  ;;  %373 = vmatprep.subr.bf16.mxu1 %v350_v13  ;;  %p474_p5 = por %p473_p4, %p472_p3 }
  0x35   :  { %p475_p6 = pnand %p474_p5, %p468_p2 }
  0x36   :  { %353 = vmatpush3.bf16.msra.mxu0 %v350_v13  ;;  %381 = vmatpush3.bf16.msra.mxu1 %v350_v13 }
  0x37   :  { %355 = vmatprep.subr.bf16.mxu0 %v354_v16  ;;  %374 = vmatprep.subr.bf16.mxu1 %v354_v16 }
  0x3a   :  { %357 = vmatpush3.bf16.msra.mxu0 %v354_v16  ;;  %382 = vmatpush3.bf16.msra.mxu1 %v354_v16 }
  0x3b   :  { %359 = vmatprep.subr.bf16.mxu0 %v358_v19  ;;  %375 = vmatprep.subr.bf16.mxu1 %v358_v19 }
  0x3e   :  { %361 = vmatpush3.bf16.msra.mxu0 %v358_v19  ;;  %383 = vmatpush3.bf16.msra.mxu1 %v358_v19 }
  0x3f   :  { %363 = vmatprep.subr.bf16.mxu0 %v362_v22  ;;  %376 = vmatprep.subr.bf16.mxu1 %v362_v22 }
  0x42   :  { %365 = vmatpush3.bf16.msra.mxu0 %v362_v22  ;;  %384 = vmatpush3.bf16.msra.mxu1 %v362_v22 }
  0x43   :  { %367 = vmatprep.subr.bf16.mxu0 %v366_v25  ;;  %377 = vmatprep.subr.bf16.mxu1 %v366_v25 }
  0x46   :  { %369 = vmatpush3.bf16.msra.mxu0 %v366_v25  ;;  %385 = vmatpush3.bf16.msra.mxu1 %v366_v25 }
  0x49   :  { %327 = vmatmul.mubr.f32.vlgmr.msra.gmra.mrb[0].mxu0 %v44_v26  ;;  %333 = vmatmul.mubr.f32.vlgmr.msra.gmra.mrb[0].mxu1 %v48_v27 }
  0x4a   :  { %329 = vmatprep.mubr.f32.mxu0 %v45_v28  ;;  %335 = vmatprep.mubr.f32.mxu1 %v49_v29 }
  0x4d   :  { %330 = vmatmul.mubr.f32.gmra.mrb[2].mxu0 %v46_v30  ;;  %336 = vmatmul.mubr.f32.gmra.mrb[2].mxu1 %v50_v31 }
 0x11c   :  { %v328_v33 = vpop.f32.mrb[0].mxu0  ;;  %v334_v34 = vpop.f32.mrb[0].mxu1 }
 0x11d   :  { %v146_v35 = vadd.f32 %v328_v33, %v261_v32  ;;  %v166_v36 = vadd.f32 %v334_v34, %v261_v32  ;;  %v140_v37 = vpop.f32.mrb[1].mxu0  ;;  %v160_v38 = vpop.f32.mrb[1].mxu1 }
 0x11e   :  { %v141_v39 = vadd.f32 %v261_v32, %v140_v37  ;;  %v161_v40 = vadd.f32 %v261_v32, %v160_v38 }
 0x11f   :  { %v263_v41 = vmul.f32 -1.442695, %v146_v35  ;;  %v267_v42 = vmul.f32 -1.442695, %v166_v36 }
 0x120   :  { %v262_v43 = vmul.f32 -1.442695, %v141_v39  ;;  %v266_v44 = vmul.f32 -1.442695, %v161_v40  ;;  %v331_v45 = vpop.f32.mrb[2].mxu0  ;;  %v337_v46 = vpop.f32.mrb[2].mxu1 }
 0x121   :  { %391 = vpow2.f32 %v263_v41  ;;  %v156_v47 = vadd.f32 %v331_v45, %v261_v32  ;;  %v176_v48 = vadd.f32 %v337_v46, %v261_v32  ;;  %v150_v49 = vpop.f32.mrb[3].mxu0  ;;  %v170_v50 = vpop.f32.mrb[3].mxu1 }
 0x122   :  { %393 = vpow2.f32 %v267_v42  ;;  %v151_v51 = vadd.f32 %v261_v32, %v150_v49  ;;  %v171_v52 = vadd.f32 %v261_v32, %v170_v50 }
 0x123   :  { %395 = vpow2.f32 %v262_v43  ;;  %v265_v53 = vmul.f32 -1.442695, %v156_v47  ;;  %v269_v54 = vmul.f32 -1.442695, %v176_v48 }
 0x124   :  { %397 = vpow2.f32 %v266_v44  ;;  %v264_v55 = vmul.f32 -1.442695, %v151_v51  ;;  %v268_v56 = vmul.f32 -1.442695, %v171_v52 }
 0x125   :  { %399 = vpow2.f32 %v265_v53 }
 0x126   :  { %401 = vpow2.f32 %v269_v54 }
 0x127   :  { %403 = vpow2.f32 %v264_v55 }
 0x128   :  { %405 = vpow2.f32 %v268_v56 }
 0x12b   :  { %v392_v57 = vpop.eup %391 }
 0x12c   :  { %v394_v58 = vpop.eup %393  ;;  %v204_v59 = vadd.f32 1.0, %v392_v57 }
 0x12d   :  { %v396_v60 = vpop.eup %395  ;;  %v208_v61 = vadd.f32 1.0, %v394_v58 }
 0x12e   :  { %v398_v62 = vpop.eup %397  ;;  %407 = vrcp.f32 %v204_v59  ;;  %v203_v63 = vadd.f32 1.0, %v396_v60 }
 0x12f   :  { %v400_v0 = vpop.eup %399  ;;  %409 = vrcp.f32 %v208_v61  ;;  %v207_v1 = vadd.f32 1.0, %v398_v62 }
 0x130   :  { %v402_v2 = vpop.eup %401  ;;  %411 = vrcp.f32 %v203_v63  ;;  %v206_v3 = vadd.f32 1.0, %v400_v0 }
 0x131   :  { %v404_v4 = vpop.eup %403  ;;  %413 = vrcp.f32 %v207_v1  ;;  %v210_v5 = vadd.f32 1.0, %v402_v2 }
 0x132   :  { %v406_v6 = vpop.eup %405  ;;  %415 = vrcp.f32 %v206_v3  ;;  %v205_v7 = vadd.f32 1.0, %v404_v4 }
 0x133   :  { %417 = vrcp.f32 %v210_v5  ;;  %v209_v8 = vadd.f32 1.0, %v406_v6 }
 0x134   :  { %419 = vrcp.f32 %v205_v7 }
 0x135   :  { %421 = vrcp.f32 %v209_v8 }
 0x138   :  { %v408_v9 = vpop.eup %407 }
 0x139   :  { %v410_v10 = vpop.eup %409  ;;  %v228_v11 = vmul.f32 %v408_v9, %v146_v35 }
 0x13a   :  { %v412_v12 = vpop.eup %411  ;;  %v232_v13 = vmul.f32 %v410_v10, %v166_v36 }
 0x13b   :  { %v414_v14 = vpop.eup %413  ;;  %236 = vst [vmem:[#allocation7 + $0x8] sm:$0xff] %v228_v11  ;;  %v227_v15 = vmul.f32 %v412_v12, %v141_v39 }
 0x13c   :  { %v416_v16 = vpop.eup %415  ;;  %240 = vst [vmem:[#allocation7 + $0x28] sm:$0xff] %v232_v13  ;;  %v231_v17 = vmul.f32 %v414_v14, %v161_v40 }
 0x13d   :  { %v418_v18 = vpop.eup %417  ;;  %235 = vst [vmem:[#allocation7] sm:$0xff] %v227_v15  ;;  %v230_v19 = vmul.f32 %v416_v16, %v156_v47 }
 0x13e   :  { %v420_v20 = vpop.eup %419  ;;  %239 = vst [vmem:[#allocation7 + $0x20] sm:$0xff] %v231_v17  ;;  %v234_v21 = vmul.f32 %v418_v18, %v176_v48 }
 0x13f   :  { %v422_v22 = vpop.eup %421  ;;  %238 = vst [vmem:[#allocation7 + $0x18] sm:$0xff] %v230_v19  ;;  %v229_v23 = vmul.f32 %v420_v20, %v151_v51 }
 0x140   :  { %242 = vst [vmem:[#allocation7 + $0x38] sm:$0xff] %v234_v21  ;;  %v233_v24 = vmul.f32 %v422_v22, %v171_v52 }
 0x141   :  { %237 = vst [vmem:[#allocation7 + $0x10] sm:$0xff] %v229_v23 }
 0x142   :  { %241 = vst [vmem:[#allocation7 + $0x30] sm:$0xff] %v233_v24 }
 0x143   :  { %478 = shalt.err (!%p475_p6)
}
 0x144   :  { %s479_s15 = scalar_lea.hbm %s571_s3, 1024 }
 0x145   :  { %p480_p7 = scmp.ne.s32.totalorder %s571_s3, %s479_s15  ;;  %p483_p8 = scmp.lt.u32.totalorder %s479_s15, %s571_s3 }
 0x147   :  { %p485_p9 = pnand %p483_p8, %p480_p7 }
 0x149   :  { %488 = shalt.err (!%p485_p9)
}
 0x14a   :  { %254 = dma.vmem_to_hbm [thread:$0]  %s249_s11, 1024, %s571_s3, [#allocation4], %s496_s22, %s496_s22, %s497_s23  }
 0x14b   :  { %493 = dma.done.wait [#allocation4], 1024  }
 0x14c   :  { %494 = vsyncadd [#allocation4], 4294966272 }
 0x14d   :  { %258 = vsyncpa [#allocation3], 1 }
 0x14e   :  { %259 = vsyncpa [#allocation6], 1 }
 0x14f   :  { %260 = vsyncpa [#allocation4], 1 }

</bundles_post_ra>
